<compile_context>
chip_gen: v6e
topology: v6e:2x2x1
jax: 0.10.0
libtpu: 0.0.40
codegen_flags: <defaults>
</compile_context>

<pallas_src>
import functools

import jax
import jax.numpy as jnp
from jax.experimental import pallas as pl
from jax.experimental.pallas import tpu as pltpu


def _round_up(x: int, m: int) -> int:
    return (x + m - 1) // m * m


def _matmul_kernel(x_ref, w_ref, o_ref, acc_ref):
    # K-reduction is the LAST grid axis ("arbitrary"); the output block stays
    # resident in VMEM across it via the f32 accumulator scratch.
    @pl.when(pl.program_id(2) == 0)
    def _():
        acc_ref[...] = jnp.zeros_like(acc_ref)

    acc_ref[...] += jnp.dot(
        x_ref[...], w_ref[...], preferred_element_type=jnp.float32
    )

    @pl.when(pl.program_id(2) == pl.num_programs(2) - 1)
    def _():
        o_ref[...] = acc_ref[...].astype(o_ref.dtype)


@functools.partial(jax.jit, static_argnames=("tm", "tn", "tk"))
def dummy_forward(x: jax.Array, w_t: jax.Array, *, tm: int = 256,
                  tn: int = 256, tk: int = 256) -> jax.Array:
    """x: [M, d] float32, w_t: [d, c] float32 (transposed nn.Linear weight)."""
    M, K = x.shape
    K2, N = w_t.shape
    assert K == K2

    # Shrink tiles for small problems, but always keep the output lane-dense
    # (last dim a multiple of 128) and the sublane dims multiples of 8.
    tm = min(tm, _round_up(M, 8))
    tn = min(tn, _round_up(N, 128))
    tk = min(tk, _round_up(K, 128))

    Mp, Np, Kp = _round_up(M, tm), _round_up(N, tn), _round_up(K, tk)

    x_p = x if (Mp == M and Kp == K) else jnp.pad(x, ((0, Mp - M), (0, Kp - K)))
    w_p = w_t if (Kp == K and Np == N) else jnp.pad(w_t, ((0, Kp - K), (0, Np - N)))

    grid = (Mp // tm, Np // tn, Kp // tk)

    out_p = pl.pallas_call(
        _matmul_kernel,
        out_shape=jax.ShapeDtypeStruct((Mp, Np), x.dtype),
        grid=grid,
        in_specs=[
            pl.BlockSpec((tm, tk), lambda i, j, k: (i, k)),
            pl.BlockSpec((tk, tn), lambda i, j, k: (k, j)),
        ],
        out_specs=pl.BlockSpec((tm, tn), lambda i, j, k: (i, j)),
        scratch_shapes=[pltpu.VMEM((tm, tn), jnp.float32)],
        compiler_params=pltpu.CompilerParams(
            # M/N parallel (v7x shards these across its 2 TensorCores),
            # K reduction arbitrary (accumulator carried across it).
            dimension_semantics=("parallel", "parallel", "arbitrary"),
        ),
        cost_estimate=pl.CostEstimate(
            flops=2 * Mp * Np * Kp,
            transcendentals=0,
            bytes_accessed=4 * (Mp * Kp + Kp * Np + Mp * Np),
        ),
    )(x_p, w_p)

    return out_p[:M, :N]


if __name__ == "__main__":
    d, c = 32, 16
    B = 8  # batch of rows fed to the linear layer

    # Deterministic parameter init mirroring nn.init.constant_(weight, 0.1):
    # PyTorch weight shape is (c, d); we store its transpose (d, c).
    w_t = jnp.full((d, c), 0.1, dtype=jnp.float32)

    key = jax.random.PRNGKey(0)
    x = jax.random.normal(key, (B, d), dtype=jnp.float32)

    y = dummy_forward(x, w_t)
    jax.block_until_ready(y)

    # Cross-check against plain-JAX reference of the PyTorch semantics.
    y_ref = x @ w_t
    assert y.shape == (B, c)
    assert jnp.allclose(y, y_ref, atol=1e-5, rtol=1e-5)

    print("KERNEL_OK")
</pallas_src>

<mosaic_0001>
module attributes {stable_mosaic.version = 11 : i64} {
  func.func @_matmul_kernel(%arg0: i32, %arg1: i32, %arg2: i32, %arg3: memref<8x128xf32, #tpu.memory_space<vmem>>, %arg4: memref<128x128xf32, #tpu.memory_space<vmem>>, %arg5: memref<8x128xf32, #tpu.memory_space<vmem>>, %arg6: memref<8x128xf32, #tpu.memory_space<vmem>>) attributes {dimension_semantics = [#tpu.dimension_semantics<parallel>, #tpu.dimension_semantics<parallel>, #tpu.dimension_semantics<arbitrary>], iteration_bounds = array<i64: 1, 1, 1>, scalar_prefetch = 0 : i64, scratch_operands = 1 : i64, tpu.core_type = #tpu.core_type<tc>, window_params = [{transform_indices = @transform_0, window_bounds = array<i64: 8, 128>}, {transform_indices = @transform_1, window_bounds = array<i64: 128, 128>}, {transform_indices = @transform_2, window_bounds = array<i64: 8, 128>}]} {
    %c0_i32 = arith.constant 0 : i32
    %0 = arith.cmpi eq, %arg2, %c0_i32 : i32
    %1 = arith.extui %0 : i1 to i32
    %c0_i32_0 = arith.constant 0 : i32
    %2 = arith.cmpi ne, %1, %c0_i32_0 : i32
    scf.if %2 {
      %cst_10 = arith.constant 0.000000e+00 : f32
      %12 = vector.broadcast %cst_10 : f32 to vector<8x128xf32>
      %c0_11 = arith.constant 0 : index
      %c0_12 = arith.constant 0 : index
      %13 = vector.load %arg6[%c0_11, %c0_12] : memref<8x128xf32, #tpu.memory_space<vmem>>, vector<8x128xf32>
      tpu.vector_store %arg6[%c0_11, %c0_12], %12 {strides = array<i32>} : memref<8x128xf32, #tpu.memory_space<vmem>>, vector<8x128xf32>,
    } else {
    }
    %c0 = arith.constant 0 : index
    %c0_1 = arith.constant 0 : index
    %3 = vector.load %arg6[%c0, %c0_1] : memref<8x128xf32, #tpu.memory_space<vmem>>, vector<8x128xf32>
    %c0_2 = arith.constant 0 : index
    %c0_3 = arith.constant 0 : index
    %4 = vector.load %arg3[%c0_2, %c0_3] : memref<8x128xf32, #tpu.memory_space<vmem>>, vector<8x128xf32>
    %c0_4 = arith.constant 0 : index
    %c0_5 = arith.constant 0 : index
    %5 = vector.load %arg4[%c0_4, %c0_5] : memref<128x128xf32, #tpu.memory_space<vmem>>, vector<128x128xf32>
    %cst = arith.constant dense<0.000000e+00> : vector<8x128xf32>
    %6 = tpu.matmul %4, %5, %cst {dimension_numbers = #tpu.dot_dimension_numbers<[1], [0], [0], [1], [0, 0, 1, 1], [], []>} : vector<8x128xf32>, vector<128x128xf32>, vector<8x128xf32> -> vector<8x128xf32>
    %7 = arith.addf %3, %6 : vector<8x128xf32>
    %c0_6 = arith.constant 0 : index
    %c0_7 = arith.constant 0 : index
    %8 = vector.load %arg6[%c0_6, %c0_7] : memref<8x128xf32, #tpu.memory_space<vmem>>, vector<8x128xf32>
    tpu.vector_store %arg6[%c0_6, %c0_7], %7 {strides = array<i32>} : memref<8x128xf32, #tpu.memory_space<vmem>>, vector<8x128xf32>,
    %c0_i32_8 = arith.constant 0 : i32
    %9 = arith.cmpi eq, %arg2, %c0_i32_8 : i32
    %10 = arith.extui %9 : i1 to i32
    %c0_i32_9 = arith.constant 0 : i32
    %11 = arith.cmpi ne, %10, %c0_i32_9 : i32
    scf.if %11 {
      %c0_10 = arith.constant 0 : index
      %c0_11 = arith.constant 0 : index
      %12 = vector.load %arg6[%c0_10, %c0_11] : memref<8x128xf32, #tpu.memory_space<vmem>>, vector<8x128xf32>
      %c0_12 = arith.constant 0 : index
      %c0_13 = arith.constant 0 : index
      %13 = vector.load %arg5[%c0_12, %c0_13] : memref<8x128xf32, #tpu.memory_space<vmem>>, vector<8x128xf32>
      tpu.vector_store %arg5[%c0_12, %c0_13], %12 {strides = array<i32>} : memref<8x128xf32, #tpu.memory_space<vmem>>, vector<8x128xf32>,
    } else {
    }
    return
  }
  func.func @transform_0(%arg0: i32, %arg1: i32, %arg2: i32) -> (i32, i32) {
    %c0_i32 = arith.constant 0 : i32
    return %arg0, %arg2 : i32, i32
  }
  func.func @transform_1(%arg0: i32, %arg1: i32, %arg2: i32) -> (i32, i32) {
    %c0_i32 = arith.constant 0 : i32
    return %arg2, %arg1 : i32, i32
  }
  func.func @transform_2(%arg0: i32, %arg1: i32, %arg2: i32) -> (i32, i32) {
    %c0_i32 = arith.constant 0 : i32
    return %arg0, %arg1 : i32, i32
  }
}

</mosaic_0001>

<bundles_post_ra>
// kernel: dummy_forward.1
= control target key start
LH: loop header
LB: loop body
LE: loop exit
PB: predicated region body
PF: predicated region fallthrough
CT: control target
= control target key end

     0   :  { %v203_v1 = vmov 0.0   ;;  %vm204_vm0 = vmmov 0   ;;  %s275_s0 = inlined_call_operand.vmem [shape: f32[8,128], index: 0, kind: input, shape index: {}]   ;;  %s276_s1 = inlined_call_operand.vmem [shape: f32[128,128], index: 1, kind: input, shape index: {}]   ;;  %s277_s2 = inlined_call_operand.hbm [shape: f32[8,128], index: 2, kind: output, shape index: {}]  }
   0x1   :  { %v34_v0 = vld [vmem:[%s276_s1 + $0x78] sm:$0xff]  ;;  %143 = vmatprep.subr.mxu0 %v203_v1  ;;  %v33_v2 = vld [vmem:[%s276_s1 + $0x70] sm:$0xff]  ;;  %175 = vmatprep.mubr.msk.f32.mxu0 %vm204_vm0, %v203_v1  ;;  %v32_v3 = vld [vmem:[%s276_s1 + $0x68] sm:$0xff] }
   0x2   :  { %144 = vmatpush3.msra.mxu0 %v34_v0  ;;  %v31_v4 = vld [vmem:[%s276_s1 + $0x60] sm:$0xff] }
   0x3   :  { %145 = vmatprep.subr.mxu0 %v203_v1 }
   0x4   :  { %146 = vmatpush3.msra.mxu0 %v33_v2 }
   0x5   :  { %147 = vmatprep.subr.mxu0 %v203_v1 }
   0x6   :  { %7 = vsyncpa [#allocation4], 0  ;;  %148 = vmatpush3.msra.mxu0 %v32_v3  ;;  %v30_v5 = vld [vmem:[%s276_s1 + $0x58] sm:$0xff]  ;;  %v29_v6 = vld [vmem:[%s276_s1 + $0x50] sm:$0xff]  ;;  %s205_s15 = smov [#allocation3]  }
   0x7   :  { %149 = vmatprep.subr.mxu0 %v203_v1  ;;  %v28_v7 = vld [vmem:[%s276_s1 + $0x48] sm:$0xff]  ;;  %v27_v8 = vld [vmem:[%s276_s1 + $0x40] sm:$0xff]  ;;  %v26_v9 = vld [vmem:[%s276_s1 + $0x38] sm:$0xff]  ;;  %s118_s16 = sshll.u32 %s205_s15, 4  ;;  %s119_s16 = int_to_ptr.vmem [resolvable:$true] %s118_s16 }
   0x8   :  { %150 = vmatpush3.msra.mxu0 %v31_v4  ;;  %v25_v10 = vld [vmem:[%s276_s1 + $0x30] sm:$0xff]  ;;  %v24_v11 = vld [vmem:[%s276_s1 + $0x28] sm:$0xff]  ;;  %v23_v12 = vld [vmem:[%s276_s1 + $0x20] sm:$0xff]  ;;  %s181_s17 = scalar_lea.vmem %s119_s16, 128  ;;  %p186_p1 = scmp.lt.s32.totalorder %s119_s16, %s119_s16 }
   0x9   :  { %151 = vmatprep.subr.mxu0 %v203_v1  ;;  %v22_v13 = vld [vmem:[%s276_s1 + $0x18] sm:$0xff]  ;;  %v21_v14 = vld [vmem:[%s276_s1 + $0x10] sm:$0xff]  ;;  %v20_v15 = vld [vmem:[%s276_s1 + $0x8] sm:$0xff]  ;;  %p182_p0 = scmp.ne.s32.totalorder %s119_s16, %s181_s17  ;;  %p187_p2 = scmp.lt.s32.totalorder %s181_s17, %s181_s17 }
   0xa   :  { %152 = vmatpush3.msra.mxu0 %v30_v5  ;;  %v19_v16 = vld [vmem:[%s276_s1] sm:$0xff] }
   0xb   :  { %153 = vmatprep.subr.mxu0 %v203_v1  ;;  %v18_v17 = vld [vmem:[%s275_s0] sm:$0xff]  ;;  %p188_p3 = por %p187_p2, %p186_p1 }
   0xc   :  { %154 = vmatpush3.msra.mxu0 %v29_v6 }
   0xd   :  { %155 = vmatprep.subr.mxu0 %v203_v1  ;;  %p189_p4 = pnand %p188_p3, %p182_p0 }
   0xe   :  { %156 = vmatpush3.msra.mxu0 %v28_v7 }
   0xf   :  { %157 = vmatprep.subr.mxu0 %v203_v1 }
  0x10   :  { %158 = vmatpush3.msra.mxu0 %v27_v8 }
  0x11   :  { %159 = vmatprep.subr.mxu0 %v203_v1 }
  0x12   :  { %160 = vmatpush3.msra.mxu0 %v26_v9 }
  0x13   :  { %161 = vmatprep.subr.mxu0 %v203_v1 }
  0x14   :  { %162 = vmatpush3.msra.mxu0 %v25_v10 }
  0x15   :  { %163 = vmatprep.subr.mxu0 %v203_v1 }
  0x16   :  { %164 = vmatpush3.msra.mxu0 %v24_v11 }
  0x17   :  { %165 = vmatprep.subr.mxu0 %v203_v1 }
  0x18   :  { %166 = vmatpush3.msra.mxu0 %v23_v12 }
  0x19   :  { %167 = vmatprep.subr.mxu0 %v203_v1 }
  0x1a   :  { %168 = vmatpush3.msra.mxu0 %v22_v13 }
  0x1b   :  { %169 = vmatprep.subr.mxu0 %v203_v1 }
  0x1c   :  { %170 = vmatpush3.msra.mxu0 %v21_v14 }
  0x1d   :  { %171 = vmatprep.subr.mxu0 %v203_v1 }
  0x1e   :  { %172 = vmatpush3.msra.mxu0 %v20_v15 }
  0x1f   :  { %173 = vmatprep.subr.mxu0 %v203_v1 }
  0x20   :  { %174 = vmatpush3.msra.mxu0 %v19_v16 }
  0x21   :  { %176 = vmatmul.mubr.f32.vlgmr.msra.gmra.mxu0 %v18_v17 }
  0xe1   :  { %v101_v18 = vpop.f32.mrf.mxu0 }
  0xe2   :  { %111 = vst [vmem:[#allocation3] sm:$0xff] %v101_v18 }
  0xe3   :  { %v177_v19 = vpop.f32.mrf.mxu0 }
  0xe4   :  { %192 = shalt.err (!%p189_p4)
}
  0xe5   :  { %121 = dma.vmem_to_hbm [thread:$0]  %s119_s16, 128, %s277_s2, [#allocation4]  }
  0xe6   :  { %201 = dma.done.wait [#allocation4], 128  }
  0xe7   :  { %202 = vsyncadd [#allocation4], 4294967168 }
  0xe8   :  { %125 = vsyncpa [#allocation4], 1 }

</bundles_post_ra>
